<compile_context>
chip_gen: v6e
topology: v6e:2x2x1
jax: 0.10.0
libtpu: 0.0.40
codegen_flags: <defaults>
</compile_context>

<pallas_src>
import functools
import math

import jax
import jax.numpy as jnp
from jax.experimental import pallas as pl
from jax.experimental.pallas import tpu as pltpu

_CDT = jnp.bfloat16              # MXU operand / activation dtype
_LN_EPS = 1e-5
_NEG_INF = -1e9


def _round_up(v, m):
    return ((v + m - 1) // m) * m


def _tpu_vmem_capacity():
    try:
        info = pltpu.get_tpu_info()
        cap = int(getattr(info, "vmem_capacity_bytes", 0))
        if cap > 0:
            return cap
    except Exception:
        pass
    return 64 * 1024 * 1024      # conservative fallback (v7x per-TC size)


_VMEM_CAP = _tpu_vmem_capacity()
_SMALL_VMEM = _VMEM_CAP <= 64 * 1024 * 1024          # v7x per-TC
_VMEM_LIMIT = int(max(min(_VMEM_CAP - (24 << 20), 96 << 20), 32 << 20))
_ATTN_TQ = 128 if _SMALL_VMEM else 256
_ATTN_TK = 256 if _SMALL_VMEM else 512
_BIG_TM = 512 if _SMALL_VMEM else 1024               # memory-side matmuls


def _cparams(*sem):
    return pltpu.CompilerParams(dimension_semantics=tuple(sem),
                                vmem_limit_bytes=_VMEM_LIMIT)


def _pick_tile(dim, target, align, min_tiles=1):
    """Largest tile <= target that is a multiple of `align` and divides `dim`;
    optionally capped so the axis gets >= min_tiles grid steps; falls back to
    the full dim (always a legal block)."""
    if min_tiles > 1 and dim >= min_tiles * align:
        target = min(target, dim // min_tiles)
    if dim <= target:
        return dim
    t = (min(target, dim) // align) * align
    while t >= align:
        if dim % t == 0:
            return t
        t -= align
    return dim


# ----------------------------------------------------------------------------
# Pallas kernels
# ----------------------------------------------------------------------------

def _linear_kernel(*refs, activation, with_pos):
    if with_pos:
        x_ref, pos_ref, w_ref, b_ref, o_ref, acc_ref = refs
    else:
        x_ref, w_ref, b_ref, o_ref, acc_ref = refs
        pos_ref = None

    @pl.when(pl.program_id(2) == 0)
    def _():
        acc_ref[...] = jnp.zeros_like(acc_ref)

    x = x_ref[...]
    if pos_ref is not None:
        x = (x.astype(jnp.float32) + pos_ref[...].astype(jnp.float32)).astype(x_ref.dtype)
    acc_ref[...] += jnp.dot(x, w_ref[...], preferred_element_type=jnp.float32)

    @pl.when(pl.program_id(2) == pl.num_programs(2) - 1)
    def _():
        y = acc_ref[...] + b_ref[...].astype(jnp.float32)
        if activation == "relu":
            y = jnp.maximum(y, 0.0)
        o_ref[...] = y.astype(o_ref.dtype)


def linear(x, w, b, pos=None, activation=None, *, tm_target=None,
           tn_target=512, tk_target=512):
    """Tiled (x [+ pos]) @ w + b with f32 accumulator.  x:(M,K) w:(K,N) b:(1,N)."""
    M, K = x.shape
    N = w.shape[1]
    if tm_target is None:
        tm_target = _BIG_TM
    tm = _pick_tile(M, tm_target, 8, min_tiles=2)
    tn = _pick_tile(N, tn_target, 128)
    tk = _pick_tile(K, tk_target, 128)
    args = [x]
    in_specs = [pl.BlockSpec((tm, tk), lambda i, j, k: (i, k))]
    if pos is not None:
        args.append(pos)
        in_specs.append(pl.BlockSpec((tm, tk), lambda i, j, k: (i, k)))
    args += [w, b]
    in_specs += [pl.BlockSpec((tk, tn), lambda i, j, k: (k, j)),
                 pl.BlockSpec((1, tn), lambda i, j, k: (0, j))]
    return pl.pallas_call(
        functools.partial(_linear_kernel, activation=activation,
                          with_pos=pos is not None),
        out_shape=jax.ShapeDtypeStruct((M, N), x.dtype),
        grid=(M // tm, N // tn, K // tk),
        in_specs=in_specs,
        out_specs=pl.BlockSpec((tm, tn), lambda i, j, k: (i, j)),
        scratch_shapes=[pltpu.VMEM((tm, tn), jnp.float32)],
        compiler_params=_cparams("parallel", "parallel", "arbitrary"),
    )(*args)


def _fused_proj_kernel(*refs, use_pos):
    """out[i] = (x [+ pos]) @ w[i] + b[i], sharing one read of x / pos."""
    nw = len(use_pos)
    x_ref, pos_ref = refs[0], refs[1]
    w_refs = refs[2:2 + nw]
    b_refs = refs[2 + nw:2 + 2 * nw]
    o_refs = refs[2 + 2 * nw:]
    x = x_ref[...]
    xp = (x.astype(jnp.float32) + pos_ref[...].astype(jnp.float32)).astype(x.dtype)
    for i in range(nw):
        inp = xp if use_pos[i] else x
        y = jnp.dot(inp, w_refs[i][...], preferred_element_type=jnp.float32)
        y = y + b_refs[i][...].astype(jnp.float32)
        o_refs[i][...] = y.astype(o_refs[i].dtype)


def fused_proj(x, pos, ws, bs, use_pos, *, tm_target=512):
    M, K = x.shape
    ns = [w.shape[1] for w in ws]
    tm = _pick_tile(M, tm_target, 8, min_tiles=2)
    in_specs = [pl.BlockSpec((tm, K), lambda i: (i, 0)),
                pl.BlockSpec((tm, K), lambda i: (i, 0))]
    in_specs += [pl.BlockSpec((K, n), lambda i: (0, 0)) for n in ns]
    in_specs += [pl.BlockSpec((1, n), lambda i: (0, 0)) for n in ns]
    out = pl.pallas_call(
        functools.partial(_fused_proj_kernel, use_pos=tuple(use_pos)),
        out_shape=tuple(jax.ShapeDtypeStruct((M, n), x.dtype) for n in ns),
        grid=(M // tm,),
        in_specs=in_specs,
        out_specs=tuple(pl.BlockSpec((tm, n), lambda i: (i, 0)) for n in ns),
        compiler_params=_cparams("parallel"),
    )(x, pos, *ws, *bs)
    if not isinstance(out, (list, tuple)):
        out = (out,)
    return tuple(out)


def _linear_ln_kernel(*refs, eps, with_res, with_proj):
    i = 0
    x_ref, w_ref, b_ref = refs[0], refs[1], refs[2]
    i = 3
    res_ref = None
    if with_res:
        res_ref = refs[i]
        i += 1
    g_ref, be_ref = refs[i], refs[i + 1]
    i += 2
    pw_ref = pb_ref = pos_ref = None
    if with_proj:
        pw_ref, pb_ref, pos_ref = refs[i], refs[i + 1], refs[i + 2]
        i += 3
    o_ref = refs[i]
    i += 1
    q_ref = refs[i] if with_proj else None

    y = jnp.dot(x_ref[...], w_ref[...], preferred_element_type=jnp.float32)
    y = y + b_ref[...].astype(jnp.float32)
    if res_ref is not None:
        y = y + res_ref[...].astype(jnp.float32)
    mean = jnp.mean(y, axis=-1, keepdims=True)
    cent = y - mean
    var = jnp.mean(cent * cent, axis=-1, keepdims=True)
    ln = cent * jax.lax.rsqrt(var + eps)
    ln = ln * g_ref[...].astype(jnp.float32) + be_ref[...].astype(jnp.float32)
    o_ref[...] = ln.astype(o_ref.dtype)
    if with_proj:
        z = (ln + pos_ref[...].astype(jnp.float32)).astype(pw_ref.dtype)
        q = jnp.dot(z, pw_ref[...], preferred_element_type=jnp.float32)
        q = q + pb_ref[...].astype(jnp.float32)
        q_ref[...] = q.astype(q_ref.dtype)


def linear_ln(x, w, b, gamma, beta, res=None, proj=None, *, tm_target=512):
    """LayerNorm(res + x @ w + b); res optional.  If proj=(pw, pb, pos) is
    given, also emits ((LN_out + pos) @ pw + pb) as a second output (used to
    fuse the cross-attn Q projection into the norm1 epilogue)."""
    M, K = x.shape
    N = w.shape[1]
    tm = _pick_tile(M, tm_target, 8, min_tiles=2)
    args = [x, w, b]
    in_specs = [pl.BlockSpec((tm, K), lambda i: (i, 0)),
                pl.BlockSpec((K, N), lambda i: (0, 0)),
                pl.BlockSpec((1, N), lambda i: (0, 0))]
    if res is not None:
        args.append(res)
        in_specs.append(pl.BlockSpec((tm, N), lambda i: (i, 0)))
    args += [gamma, beta]
    in_specs += [pl.BlockSpec((1, N), lambda i: (0, 0)),
                 pl.BlockSpec((1, N), lambda i: (0, 0))]
    out_shapes = [jax.ShapeDtypeStruct((M, N), x.dtype)]
    out_specs = [pl.BlockSpec((tm, N), lambda i: (i, 0))]
    if proj is not None:
        pw, pb, pos = proj
        Np = pw.shape[1]
        args += [pw, pb, pos]
        in_specs += [pl.BlockSpec((N, Np), lambda i: (0, 0)),
                     pl.BlockSpec((1, Np), lambda i: (0, 0)),
                     pl.BlockSpec((tm, N), lambda i: (i, 0))]
        out_shapes.append(jax.ShapeDtypeStruct((M, Np), x.dtype))
        out_specs.append(pl.BlockSpec((tm, Np), lambda i: (i, 0)))
    out = pl.pallas_call(
        functools.partial(_linear_ln_kernel, eps=_LN_EPS,
                          with_res=res is not None, with_proj=proj is not None),
        out_shape=tuple(out_shapes) if proj is not None else out_shapes[0],
        grid=(M // tm,),
        in_specs=in_specs,
        out_specs=tuple(out_specs) if proj is not None else out_specs[0],
        compiler_params=_cparams("parallel"),
    )(*args)
    return out


def _ffn_kernel(x_ref, w1_ref, b1_ref, w2_ref, b2_ref, g3_ref, be3_ref,
                gd_ref, bed_ref, o_ref, i_ref, acc_ref, *, eps):
    @pl.when(pl.program_id(1) == 0)
    def _():
        acc_ref[...] = jnp.zeros_like(acc_ref)

    h = jnp.dot(x_ref[...], w1_ref[...], preferred_element_type=jnp.float32)
    h = jnp.maximum(h + b1_ref[...].astype(jnp.float32), 0.0).astype(x_ref.dtype)
    acc_ref[...] += jnp.dot(h, w2_ref[...], preferred_element_type=jnp.float32)

    @pl.when(pl.program_id(1) == pl.num_programs(1) - 1)
    def _():
        y = acc_ref[...] + b2_ref[...].astype(jnp.float32)
        y = y + x_ref[...].astype(jnp.float32)            # residual

        def _ln(v, g, b):
            mean = jnp.mean(v, axis=-1, keepdims=True)
            cent = v - mean
            var = jnp.mean(cent * cent, axis=-1, keepdims=True)
            return cent * jax.lax.rsqrt(var + eps) * g + b

        y = _ln(y, g3_ref[...].astype(jnp.float32), be3_ref[...].astype(jnp.float32))
        o_ref[...] = y.astype(o_ref.dtype)                 # next-layer input
        i_ref[...] = _ln(y, gd_ref[...].astype(jnp.float32),
                         bed_ref[...].astype(jnp.float32)).astype(i_ref.dtype)


def ffn(x, w1, b1, w2, b2, norm3, dec_norm, *, tm_target=256, tf_target=512):
    """Fused lin1+ReLU+lin2 (K-tiled over dim_feedforward) + residual + norm3;
    also emits decoder_norm(result) as a second output."""
    M, D = x.shape
    F = w1.shape[1]
    tm = _pick_tile(M, tm_target, 8, min_tiles=2)
    tf = _pick_tile(F, tf_target, 128)
    g3, be3 = norm3
    gd, bed = dec_norm
    out = pl.pallas_call(
        functools.partial(_ffn_kernel, eps=_LN_EPS),
        out_shape=(jax.ShapeDtypeStruct((M, D), x.dtype),
                   jax.ShapeDtypeStruct((M, D), x.dtype)),
        grid=(M // tm, F // tf),
        in_specs=[
            pl.BlockSpec((tm, D), lambda i, f: (i, 0)),
            pl.BlockSpec((D, tf), lambda i, f: (0, f)),
            pl.BlockSpec((1, tf), lambda i, f: (0, f)),
            pl.BlockSpec((tf, D), lambda i, f: (f, 0)),
            pl.BlockSpec((1, D), lambda i, f: (0, 0)),
            pl.BlockSpec((1, D), lambda i, f: (0, 0)),
            pl.BlockSpec((1, D), lambda i, f: (0, 0)),
            pl.BlockSpec((1, D), lambda i, f: (0, 0)),
            pl.BlockSpec((1, D), lambda i, f: (0, 0)),
        ],
        out_specs=(pl.BlockSpec((tm, D), lambda i, f: (i, 0)),
                   pl.BlockSpec((tm, D), lambda i, f: (i, 0))),
        scratch_shapes=[pltpu.VMEM((tm, D), jnp.float32)],
        compiler_params=_cparams("parallel", "arbitrary"),
    )(x, w1, b1, w2, b2, g3, be3, gd, bed)
    return out[0], out[1]


def _mha_kernel(q_ref, k_ref, v_ref, bias_ref, o_ref, m_ref, l_ref, acc_ref,
                *, num_heads, scale):
    """All heads per step, online softmax over the (tiled) key axis, additive
    bias broadcast in-kernel.  Q/K/V stay bf16 MXU operands; the softmax scale
    is folded into Q once; the accumulator is a lane-dense (tq, D) f32 slab."""
    kv = pl.program_id(2)

    @pl.when(kv == 0)
    def _():
        m_ref[...] = jnp.full_like(m_ref, -jnp.inf)
        l_ref[...] = jnp.zeros_like(l_ref)
        acc_ref[...] = jnp.zeros_like(acc_ref)

    q = (q_ref[0].astype(jnp.float32) * scale).astype(q_ref.dtype)   # (tq, D)
    k = k_ref[0]                                # (tk, D) bf16
    v = v_ref[0]                                # (tk, D) bf16
    bias = bias_ref[0].astype(jnp.float32)      # (1 or tq, tk)
    dh = q.shape[-1] // num_heads

    for h in range(num_heads):
        sl = slice(h * dh, (h + 1) * dh)
        s = jax.lax.dot_general(q[:, sl], k[:, sl], (((1,), (1,)), ((), ())),
                                preferred_element_type=jnp.float32)
        s = s + bias                            # (tq, tk)
        m_prev = m_ref[h]
        m_new = jnp.maximum(m_prev, jnp.max(s, axis=-1, keepdims=True))
        alpha = jnp.exp(m_prev - m_new)
        p = jnp.exp(s - m_new)
        l_ref[h] = alpha * l_ref[h] + jnp.sum(p, axis=-1, keepdims=True)
        acc_ref[:, sl] = alpha * acc_ref[:, sl] + jnp.dot(
            p.astype(v.dtype), v[:, sl], preferred_element_type=jnp.float32)
        m_ref[h] = m_new

    @pl.when(kv == pl.num_programs(2) - 1)
    def _():
        for h in range(num_heads):
            sl = slice(h * dh, (h + 1) * dh)
            acc_ref[:, sl] = acc_ref[:, sl] * pl.reciprocal(l_ref[h], approx=True)
        o_ref[0] = acc_ref[...].astype(o_ref.dtype)


def attention(q, k, v, bias, num_heads, *, tq_target=None, tk_target=None):
    """q:(B,Lq,D), k/v:(B,Lk,D), bias additive with shape (1 or B, 1 or Lq, Lk)."""
    if tq_target is None:
        tq_target = _ATTN_TQ
    if tk_target is None:
        tk_target = _ATTN_TK
    B, Lq, D = q.shape
    Lk = k.shape[1]
    dh = D // num_heads
    tq = _pick_tile(Lq, tq_target, 8, min_tiles=2 if B == 1 else 1)
    tk = _pick_tile(Lk, tk_target, 128)
    bias_b, bias_lq = bias.shape[0], bias.shape[1]
    bq_blk = tq if bias_lq == Lq else 1

    def bias_idx(b, qi, ki):
        return ((b if bias_b > 1 else 0), (qi if bias_lq > 1 else 0), ki)

    return pl.pallas_call(
        functools.partial(_mha_kernel, num_heads=num_heads,
                          scale=1.0 / math.sqrt(dh)),
        out_shape=jax.ShapeDtypeStruct((B, Lq, D), q.dtype),
        grid=(B, Lq // tq, Lk // tk),
        in_specs=[
            pl.BlockSpec((1, tq, D), lambda b, qi, ki: (b, qi, 0)),
            pl.BlockSpec((1, tk, D), lambda b, qi, ki: (b, ki, 0)),
            pl.BlockSpec((1, tk, D), lambda b, qi, ki: (b, ki, 0)),
            pl.BlockSpec((1, bq_blk, tk), bias_idx),
        ],
        out_specs=pl.BlockSpec((1, tq, D), lambda b, qi, ki: (b, qi, 0)),
        scratch_shapes=[
            pltpu.VMEM((num_heads, tq, 1), jnp.float32),
            pltpu.VMEM((num_heads, tq, 1), jnp.float32),
            pltpu.VMEM((tq, D), jnp.float32),
        ],
        compiler_params=_cparams("parallel", "parallel", "arbitrary"),
    )(q, k, v, bias)


def _heads_kernel(x_ref, wca_ref, bca_ref, w1_ref, b1_ref, w2_ref, b2_ref,
                  w3_ref, b3_ref, ca_ref, box_ref):
    x = x_ref[...]
    ca = jnp.dot(x, wca_ref[...], preferred_element_type=jnp.float32)
    ca_ref[...] = (ca + bca_ref[...].astype(jnp.float32)).astype(ca_ref.dtype)
    h = jnp.dot(x, w1_ref[...], preferred_element_type=jnp.float32)
    h = jnp.maximum(h + b1_ref[...].astype(jnp.float32), 0.0).astype(x.dtype)
    h = jnp.dot(h, w2_ref[...], preferred_element_type=jnp.float32)
    h = jnp.maximum(h + b2_ref[...].astype(jnp.float32), 0.0).astype(x.dtype)
    box = jnp.dot(h, w3_ref[...], preferred_element_type=jnp.float32)
    box_ref[...] = jax.nn.sigmoid(box + b3_ref[...].astype(jnp.float32)).astype(box_ref.dtype)


def predictor_heads(x, params, *, tm_target=512):
    """Fused class / action / 3-layer bbox MLP heads, two lane-dense outputs
    (class+action padded to a 128 multiple, bbox padded to 128)."""
    M, D = x.shape
    wca = jnp.concatenate([params["class_w"], params["action_w"]], axis=1)
    bca = jnp.concatenate([params["class_b"], params["action_b"]], axis=1)
    C1A = wca.shape[1]
    ca_pad = _round_up(C1A, 128)
    if ca_pad != C1A:
        wca = jnp.pad(wca, ((0, 0), (0, ca_pad - C1A)))
        bca = jnp.pad(bca, ((0, 0), (0, ca_pad - C1A)))
    box_pad = 128
    w3 = jnp.pad(params["bbox_w3"], ((0, 0), (0, box_pad - 4)))
    b3 = jnp.pad(params["bbox_b3"], ((0, 0), (0, box_pad - 4)))
    tm = _pick_tile(M, tm_target, 8, min_tiles=2)
    ca_out, box_out = pl.pallas_call(
        _heads_kernel,
        out_shape=(jax.ShapeDtypeStruct((M, ca_pad), jnp.float32),
                   jax.ShapeDtypeStruct((M, box_pad), jnp.float32)),
        grid=(M // tm,),
        in_specs=[
            pl.BlockSpec((tm, D), lambda i: (i, 0)),
            pl.BlockSpec((D, ca_pad), lambda i: (0, 0)),
            pl.BlockSpec((1, ca_pad), lambda i: (0, 0)),
            pl.BlockSpec((D, D), lambda i: (0, 0)),
            pl.BlockSpec((1, D), lambda i: (0, 0)),
            pl.BlockSpec((D, D), lambda i: (0, 0)),
            pl.BlockSpec((1, D), lambda i: (0, 0)),
            pl.BlockSpec((D, box_pad), lambda i: (0, 0)),
            pl.BlockSpec((1, box_pad), lambda i: (0, 0)),
        ],
        out_specs=(pl.BlockSpec((tm, ca_pad), lambda i: (i, 0)),
                   pl.BlockSpec((tm, box_pad), lambda i: (i, 0))),
        compiler_params=_cparams("parallel"),
    )(x, wca, bca, params["bbox_w1"], params["bbox_b1"],
      params["bbox_w2"], params["bbox_b2"], w3, b3)
    return ca_out[:, :C1A], box_out[:, :4]


# ----------------------------------------------------------------------------
# Glue: positional encodings, parameter init, model wiring
# ----------------------------------------------------------------------------

def position_embedding_sine(mask, num_pos_feats, temperature=10000.0):
    """DETR sine positional encoding.  mask: (B,H,W) bool (True = padding).
    Returns channel-last (B, H, W, 2*num_pos_feats)."""
    not_mask = jnp.logical_not(mask).astype(jnp.float32)
    y_embed = jnp.cumsum(not_mask, axis=1)
    x_embed = jnp.cumsum(not_mask, axis=2)
    eps = 1e-6
    scale = 2.0 * math.pi
    y_embed = y_embed / (y_embed[:, -1:, :] + eps) * scale
    x_embed = x_embed / (x_embed[:, :, -1:] + eps) * scale
    dim_t = jnp.arange(num_pos_feats, dtype=jnp.float32)
    dim_t = temperature ** (2.0 * jnp.floor(dim_t / 2.0) / num_pos_feats)
    pos_x = x_embed[..., None] / dim_t
    pos_y = y_embed[..., None] / dim_t
    pos_x = jnp.stack([jnp.sin(pos_x[..., 0::2]), jnp.cos(pos_x[..., 1::2])],
                      axis=4).reshape(*pos_x.shape[:3], -1)
    pos_y = jnp.stack([jnp.sin(pos_y[..., 0::2]), jnp.cos(pos_y[..., 1::2])],
                      axis=4).reshape(*pos_y.shape[:3], -1)
    return jnp.concatenate([pos_y, pos_x], axis=3)          # (B, H, W, D)


def box_embedding_sine(image_size, boxes, hidden_dim, temperature=10000.0):
    # TODO(synk): exact build_box_encoding implementation is unavailable; this
    # is a standard sine encoding of normalized (x1, y1, x2, y2) coordinates.
    h, w = image_size
    scale = 2.0 * math.pi
    norm = boxes / jnp.array([w, h, w, h], jnp.float32) * scale   # (n, 4)
    num_feats = hidden_dim // 4
    dim_t = jnp.arange(num_feats, dtype=jnp.float32)
    dim_t = temperature ** (2.0 * jnp.floor(dim_t / 2.0) / num_feats)
    pos = norm[..., None] / dim_t                                 # (n, 4, F)
    pos = jnp.stack([jnp.sin(pos[..., 0::2]), jnp.cos(pos[..., 1::2])],
                    axis=-1).reshape(boxes.shape[0], -1)          # (n, 4*F)
    return pos


def _xavier(key, shape, dtype=jnp.float32):
    fan_in, fan_out = shape
    limit = math.sqrt(6.0 / (fan_in + fan_out))
    return jax.random.uniform(key, shape, jnp.float32, -limit, limit).astype(dtype)


def init_params(key, *, c_in, vis_dim, hidden_dim, num_layers, dim_feedforward,
                num_duplicates, num_classes, num_actions):
    keys = iter(jax.random.split(key, 512))

    def lin(kin, kout):
        return (_xavier(next(keys), (kin, kout), _CDT),
                jnp.zeros((1, kout), jnp.float32))

    def norm(d):
        return jnp.ones((1, d), jnp.float32), jnp.zeros((1, d), jnp.float32)

    def attn(d):
        wq, bq = lin(d, d)
        wk, bk = lin(d, d)
        wv, bv = lin(d, d)
        wo, bo = lin(d, d)
        return dict(wq=wq, bq=bq, wk=wk, bk=bk, wv=wv, bv=bv, wo=wo, bo=bo)

    p = {}
    p["input_proj_w"], p["input_proj_b"] = lin(c_in, hidden_dim)   # 1x1 conv
    p["query_proj_w"], p["query_proj_b"] = lin(vis_dim, hidden_dim)
    p["query_norm"] = norm(hidden_dim)
    p["offset_embed"] = _xavier(next(keys), (num_duplicates, hidden_dim))
    layers = []
    for _ in range(num_layers):
        lw1, lb1 = lin(hidden_dim, dim_feedforward)
        lw2, lb2 = lin(dim_feedforward, hidden_dim)
        layers.append(dict(self_attn=attn(hidden_dim), cross_attn=attn(hidden_dim),
                           lin1_w=lw1, lin1_b=lb1, lin2_w=lw2, lin2_b=lb2,
                           norm1=norm(hidden_dim), norm2=norm(hidden_dim),
                           norm3=norm(hidden_dim)))
    p["decoder_layers"] = layers
    p["decoder_norm"] = norm(hidden_dim)
    p["class_w"], p["class_b"] = lin(hidden_dim, num_classes + 1)
    p["bbox_w1"], p["bbox_b1"] = lin(hidden_dim, hidden_dim)
    p["bbox_w2"], p["bbox_b2"] = lin(hidden_dim, hidden_dim)
    p["bbox_w3"], p["bbox_b3"] = lin(hidden_dim, 4)
    p["action_w"], p["action_b"] = lin(hidden_dim, num_actions)
    return p


def prepare_queries(params, queries, masks, *, num_duplicates, hidden_dim):
    bs = len(queries)
    vis_dim = queries[0]["features"].shape[-1]
    n_person = max(q["features"].shape[0] for q in queries)
    nq = n_person * num_duplicates
    nqp = _round_up(nq, 8)                     # padded query count for tiling

    vis_l, box_l, bemb_l, cls_l, sc_l = [], [], [], [], []
    for q in queries:
        vis_l.append(jnp.repeat(q["features"], num_duplicates, axis=0))
        box_l.append(jnp.repeat(q["boxes"], num_duplicates, axis=0))
        bemb = box_embedding_sine(q["image_size"], q["boxes"], hidden_dim)
        bemb_l.append(jnp.repeat(bemb, num_duplicates, axis=0))
        cls_l.append(jnp.repeat(q["classes"], num_duplicates, axis=0))
        sc_l.append(jnp.repeat(q["scores"], num_duplicates, axis=0))

    query_vis = jnp.stack(vis_l, axis=0)            # (B, Nq, vis_dim)
    query_box_embs = jnp.stack(bemb_l, axis=0)      # (B, Nq, D)
    query_boxes = jnp.stack(box_l, axis=1)          # (Nq, B, 4) reference layout
    query_classes = jnp.stack(cls_l, axis=1)        # (Nq, B)
    query_scores = jnp.stack(sc_l, axis=1)          # (Nq, B)

    if nqp != nq:
        query_vis = jnp.pad(query_vis, ((0, 0), (0, nqp - nq), (0, 0)))
        query_box_embs = jnp.pad(query_box_embs, ((0, 0), (0, nqp - nq), (0, 0)))

    # Additive self-attention bias: duplicates of the same person may attend
    # to each other; all other pairs (and padded keys) are blocked.
    idx = jnp.arange(nqp)
    person = idx // num_duplicates
    key_valid = idx < nq
    blocked = (person[:, None] != person[None, :]) | (~key_valid[None, :])
    tgt_bias = jnp.where(blocked, _NEG_INF, 0.0)[None, :, :].astype(jnp.float32)

    gq, bq = params["query_norm"]
    x = query_vis.reshape(bs * nqp, vis_dim).astype(_CDT)
    feat = linear_ln(x, params["query_proj_w"], params["query_proj_b"], gq, bq)
    query_feat = (feat.reshape(bs, nqp, hidden_dim).astype(jnp.float32)
                  + query_box_embs).astype(_CDT)

    return dict(query_feat=query_feat, tgt_bias=tgt_bias, nq=nq, nqp=nqp,
                query_boxes=query_boxes, query_classes=query_classes,
                query_scores=query_scores)


def decoder_layer_forward(tgt2d, mem_k, mem_v, tgt_bias, mem_bias, qpos2d,
                          lp, dec_norm, num_heads, dims):
    """One post-norm decoder layer (value_with_pos=False, dropout=identity).
    Cross-attn K/V are precomputed (hoisted) once for all layers."""
    B, Nq, HW, D = dims

    # --- self attention ---
    sa = lp["self_attn"]
    ca = lp["cross_attn"]
    q2d, k2d, v2d = fused_proj(tgt2d, qpos2d,
                               (sa["wq"], sa["wk"], sa["wv"]),
                               (sa["bq"], sa["bk"], sa["bv"]),
                               (True, True, False))
    attn_o = attention(q2d.reshape(B, Nq, D), k2d.reshape(B, Nq, D),
                       v2d.reshape(B, Nq, D), tgt_bias, num_heads)
    # fused: out-proj + residual + norm1 + cross-attn Q projection (with qpos)
    tgt2d, q2d = linear_ln(attn_o.reshape(B * Nq, D), sa["wo"], sa["bo"],
                           lp["norm1"][0], lp["norm1"][1], res=tgt2d,
                           proj=(ca["wq"], ca["bq"], qpos2d))

    # --- cross attention (K/V hoisted) ---
    attn_o = attention(q2d.reshape(B, Nq, D), mem_k, mem_v, mem_bias, num_heads)
    tgt2d = linear_ln(attn_o.reshape(B * Nq, D), ca["wo"], ca["bo"],
                      lp["norm2"][0], lp["norm2"][1], res=tgt2d)

    # --- FFN + norm3 + decoder_norm (intermediate output) ---
    tgt2d, interm2d = ffn(tgt2d, lp["lin1_w"], lp["lin1_b"],
                          lp["lin2_w"], lp["lin2_b"], lp["norm3"], dec_norm)
    return tgt2d, interm2d


def hoi_transformer_forward(params, features_nchw, masks, queries, image_sizes,
                            *, hidden_dim, num_heads, num_duplicates):
    B, C, Hh, Ww = features_nchw.shape
    HW = Hh * Ww
    HWp = _round_up(HW, 256)                    # padded key/token count
    D = hidden_dim

    # input_proj: 1x1 conv == per-pixel linear; batch-first token layout.
    tok = jnp.transpose(features_nchw, (0, 2, 3, 1)).reshape(B, HW, C)
    if HWp != HW:
        tok = jnp.pad(tok, ((0, 0), (0, HWp - HW), (0, 0)))
    x2d = tok.reshape(B * HWp, C).astype(_CDT)
    memory2d = linear(x2d, params["input_proj_w"], params["input_proj_b"],
                      tm_target=_BIG_TM)

    pos = position_embedding_sine(masks, D // 2).reshape(B, HW, D)
    if HWp != HW:
        pos = jnp.pad(pos, ((0, 0), (0, HWp - HW), (0, 0)))
    mem_pos2d = pos.reshape(B * HWp, D).astype(_CDT)

    mask_flat = masks.reshape(B, HW)
    if HWp != HW:
        mask_flat = jnp.pad(mask_flat, ((0, 0), (0, HWp - HW)),
                            constant_values=True)
    # Key-padding bias kept as a single (B, 1, HWp) row; broadcast in-kernel.
    mem_bias = jnp.where(mask_flat[:, None, :], _NEG_INF, 0.0).astype(jnp.float32)

    # Hoisted cross-attention K/V: memory / pos never change across layers,
    # so project them once for all layers with concatenated weights.
    layers = params["decoder_layers"]
    L = len(layers)
    wk_cat = jnp.concatenate([lp["cross_attn"]["wk"] for lp in layers], axis=1)
    bk_cat = jnp.concatenate([lp["cross_attn"]["bk"] for lp in layers], axis=1)
    wv_cat = jnp.concatenate([lp["cross_attn"]["wv"] for lp in layers], axis=1)
    bv_cat = jnp.concatenate([lp["cross_attn"]["bv"] for lp in layers], axis=1)
    mem_k_all = linear(memory2d, wk_cat, bk_cat, pos=mem_pos2d,
                       tm_target=_BIG_TM).reshape(B, HWp, L, D)
    mem_v_all = linear(memory2d, wv_cat, bv_cat,
                       tm_target=_BIG_TM).reshape(B, HWp, L, D)

    qinst = prepare_queries(params, queries, masks,
                            num_duplicates=num_duplicates, hidden_dim=D)
    tgt = qinst["query_feat"]                               # (B, Nqp, D) bf16
    Nq, Nqp = qinst["nq"], qinst["nqp"]
    n_person = Nq // num_duplicates

    # offset_embed: cat([weight]*num_queries) -> (Nq, D), broadcast over batch
    offset = jnp.tile(params["offset_embed"], (n_person, 1))
    if Nqp != Nq:
        offset = jnp.pad(offset, ((0, Nqp - Nq), (0, 0)))
    qpos2d = jnp.broadcast_to(offset[None], (B, Nqp, D)).reshape(B * Nqp, D).astype(_CDT)

    tgt_bias = qinst["tgt_bias"]                            # (1, Nqp, Nqp) f32

    tgt2d = tgt.reshape(B * Nqp, D)
    dims = (B, Nqp, HWp, D)
    intermediates = []
    for l, lp in enumerate(layers):
        mem_k = mem_k_all[:, :, l, :]
        mem_v = mem_v_all[:, :, l, :]
        tgt2d, interm2d = decoder_layer_forward(
            tgt2d, mem_k, mem_v, tgt_bias, mem_bias, qpos2d,
            lp, params["decoder_norm"], num_heads, dims)
        intermediates.append(interm2d)
    hidden = jnp.stack(intermediates, axis=0)               # (L, B*Nqp, D)

    # fused predictor heads over all layers at once (two lane-dense outputs)
    ca_out, box_out = predictor_heads(hidden.reshape(L * B * Nqp, D), params)
    C1 = params["class_b"].shape[1]
    A = params["action_b"].shape[1]
    ca_out = ca_out.reshape(L, B, Nqp, C1 + A)[:, :, :Nq, :]
    box_out = box_out.reshape(L, B, Nqp, 4)[:, :, :Nq, :]
    scores = jnp.transpose(ca_out[..., :C1], (0, 2, 1, 3))   # (L, Nq, B, C1)
    actions = jnp.transpose(ca_out[..., C1:], (0, 2, 1, 3))  # (L, Nq, B, A)
    boxes = jnp.transpose(box_out, (0, 2, 1, 3))             # (L, Nq, B, 4)

    predictions = {
        "pred_logits": scores[-1],      # (Nq, B, num_classes + 1)
        "pred_boxes": boxes[-1],        # (Nq, B, 4), already sigmoid'ed
        "pred_actions": actions[-1],    # (Nq, B, num_actions)
        "aux_outputs": [
            {"pred_logits": s, "pred_boxes": b, "pred_actions": c}
            for s, b, c in zip(scores[:-1], boxes[:-1], actions[:-1])
        ],
    }
    # TODO(synk): SetCriterion losses and inference_single_image's nonzero /
    # dynamic top-k filtering are data dependent and not implemented as kernels.
    return predictions, qinst


if __name__ == "__main__":
    key = jax.random.PRNGKey(0)
    B, C_IN, H, W = 2, 4, 16, 16
    VIS_DIM = 16
    HIDDEN = 32
    HEADS = 4
    N_LAYERS = 2
    FFN_DIM = 64
    DUP = 4
    N_PERSON = 2
    N_CLASSES = 5
    N_ACTIONS = 7

    kp, kf, kq = jax.random.split(key, 3)
    params = init_params(kp, c_in=C_IN, vis_dim=VIS_DIM, hidden_dim=HIDDEN,
                         num_layers=N_LAYERS, dim_feedforward=FFN_DIM,
                         num_duplicates=DUP, num_classes=N_CLASSES,
                         num_actions=N_ACTIONS)

    feat = jax.random.normal(kf, (B, C_IN, H, W), jnp.float32)
    masks = jnp.zeros((B, H, W), bool).at[1, :, W - 4:].set(True)

    queries = []
    for i in range(B):
        ki = jax.random.fold_in(kq, i)
        queries.append(dict(
            features=jax.random.normal(ki, (N_PERSON, VIS_DIM), jnp.float32),
            boxes=jnp.array([[4.0, 4.0, 20.0, 28.0],
                             [10.0, 6.0, 40.0, 50.0]], jnp.float32) + float(i),
            scores=jnp.array([0.9, 0.7], jnp.float32),
            classes=jnp.array([0, 0], jnp.int32),
            image_size=(64.0, 64.0),
        ))
    image_sizes = [(64, 64)] * B

    preds, qinst = hoi_transformer_forward(
        params, feat, masks, queries, image_sizes,
        hidden_dim=HIDDEN, num_heads=HEADS, num_duplicates=DUP)

    NQ = N_PERSON * DUP
    assert preds["pred_logits"].shape == (NQ, B, N_CLASSES + 1)
    assert preds["pred_boxes"].shape == (NQ, B, 4)
    assert preds["pred_actions"].shape == (NQ, B, N_ACTIONS)
    assert bool(jnp.all(jnp.isfinite(preds["pred_logits"])))
    assert bool(jnp.all(jnp.isfinite(preds["pred_boxes"])))

    jax.block_until_ready(preds["pred_logits"])
    jax.block_until_ready(preds["pred_boxes"])
    jax.block_until_ready(preds["pred_actions"])
    print("KERNEL_OK")
</pallas_src>

<mosaic_0001>
module attributes {stable_mosaic.version = 11 : i64} {
  func.func @_linear_kernel(%arg0: i32, %arg1: i32, %arg2: i32, %arg3: memref<256x4xbf16, #tpu.memory_space<vmem>>, %arg4: memref<4x32xbf16, #tpu.memory_space<vmem>>, %arg5: memref<1x32xf32, #tpu.memory_space<vmem>>, %arg6: memref<256x32xbf16, #tpu.memory_space<vmem>>, %arg7: memref<256x32xf32, #tpu.memory_space<vmem>>) attributes {dimension_semantics = [#tpu.dimension_semantics<parallel>, #tpu.dimension_semantics<parallel>, #tpu.dimension_semantics<arbitrary>], iteration_bounds = array<i64: 2, 1, 1>, scalar_prefetch = 0 : i64, scratch_operands = 1 : i64, tpu.core_type = #tpu.core_type<tc>, window_params = [{transform_indices = @transform_0, window_bounds = array<i64: 256, 4>}, {transform_indices = @transform_1, window_bounds = array<i64: 4, 32>}, {transform_indices = @transform_2, window_bounds = array<i64: 1, 32>}, {transform_indices = @transform_3, window_bounds = array<i64: 256, 32>}]} {
    %c0_i32 = arith.constant 0 : i32
    %0 = arith.cmpi eq, %arg2, %c0_i32 : i32
    %1 = arith.extui %0 : i1 to i32
    %c0_i32_0 = arith.constant 0 : i32
    %2 = arith.cmpi ne, %1, %c0_i32_0 : i32
    scf.if %2 {
      %cst_10 = arith.constant 0.000000e+00 : f32
      %12 = vector.broadcast %cst_10 : f32 to vector<256x32xf32>
      %c0_11 = arith.constant 0 : index
      %c0_12 = arith.constant 0 : index
      %13 = vector.load %arg7[%c0_11, %c0_12] : memref<256x32xf32, #tpu.memory_space<vmem>>, vector<256x32xf32>
      tpu.vector_store %arg7[%c0_11, %c0_12], %12 {strides = array<i32>} : memref<256x32xf32, #tpu.memory_space<vmem>>, vector<256x32xf32>,
    } else {
    }
    %c0 = arith.constant 0 : index
    %c0_1 = arith.constant 0 : index
    %3 = vector.load %arg3[%c0, %c0_1] : memref<256x4xbf16, #tpu.memory_space<vmem>>, vector<256x4xbf16>
    %c0_2 = arith.constant 0 : index
    %c0_3 = arith.constant 0 : index
    %4 = vector.load %arg7[%c0_2, %c0_3] : memref<256x32xf32, #tpu.memory_space<vmem>>, vector<256x32xf32>
    %c0_4 = arith.constant 0 : index
    %c0_5 = arith.constant 0 : index
    %5 = vector.load %arg4[%c0_4, %c0_5] : memref<4x32xbf16, #tpu.memory_space<vmem>>, vector<4x32xbf16>
    %cst = arith.constant dense<0.000000e+00> : vector<256x32xf32>
    %6 = tpu.matmul %3, %5, %cst {dimension_numbers = #tpu.dot_dimension_numbers<[1], [0], [0], [1], [0, 0, 1, 1], [], []>} : vector<256x4xbf16>, vector<4x32xbf16>, vector<256x32xf32> -> vector<256x32xf32>
    %7 = arith.addf %4, %6 : vector<256x32xf32>
    %c0_6 = arith.constant 0 : index
    %c0_7 = arith.constant 0 : index
    %8 = vector.load %arg7[%c0_6, %c0_7] : memref<256x32xf32, #tpu.memory_space<vmem>>, vector<256x32xf32>
    tpu.vector_store %arg7[%c0_6, %c0_7], %7 {strides = array<i32>} : memref<256x32xf32, #tpu.memory_space<vmem>>, vector<256x32xf32>,
    %c0_i32_8 = arith.constant 0 : i32
    %9 = arith.cmpi eq, %arg2, %c0_i32_8 : i32
    %10 = arith.extui %9 : i1 to i32
    %c0_i32_9 = arith.constant 0 : i32
    %11 = arith.cmpi ne, %10, %c0_i32_9 : i32
    scf.if %11 {
      %c0_10 = arith.constant 0 : index
      %c0_11 = arith.constant 0 : index
      %12 = vector.load %arg7[%c0_10, %c0_11] : memref<256x32xf32, #tpu.memory_space<vmem>>, vector<256x32xf32>
      %c0_12 = arith.constant 0 : index
      %c0_13 = arith.constant 0 : index
      %13 = vector.load %arg5[%c0_12, %c0_13] : memref<1x32xf32, #tpu.memory_space<vmem>>, vector<1x32xf32>
      %14 = vector.broadcast %13 : vector<1x32xf32> to vector<256x32xf32>
      %15 = arith.addf %12, %14 : vector<256x32xf32>
      %16 = arith.truncf %15 : vector<256x32xf32> to vector<256x32xbf16>
      %c0_14 = arith.constant 0 : index
      %c0_15 = arith.constant 0 : index
      %17 = vector.load %arg6[%c0_14, %c0_15] : memref<256x32xbf16, #tpu.memory_space<vmem>>, vector<256x32xbf16>
      tpu.vector_store %arg6[%c0_14, %c0_15], %16 {strides = array<i32>} : memref<256x32xbf16, #tpu.memory_space<vmem>>, vector<256x32xbf16>,
    } else {
    }
    return
  }
  func.func @transform_0(%arg0: i32, %arg1: i32, %arg2: i32) -> (i32, i32) {
    %c0_i32 = arith.constant 0 : i32
    return %arg0, %arg2 : i32, i32
  }
  func.func @transform_1(%arg0: i32, %arg1: i32, %arg2: i32) -> (i32, i32) {
    %c0_i32 = arith.constant 0 : i32
    return %arg2, %arg1 : i32, i32
  }
  func.func @transform_2(%arg0: i32, %arg1: i32, %arg2: i32) -> (i32, i32) {
    %c0_i32 = arith.constant 0 : i32
    %c0_i32_0 = arith.constant 0 : i32
    return %c0_i32, %arg1 : i32, i32
  }
  func.func @transform_3(%arg0: i32, %arg1: i32, %arg2: i32) -> (i32, i32) {
    %c0_i32 = arith.constant 0 : i32
    return %arg0, %arg1 : i32, i32
  }
}

</mosaic_0001>

<bundles_post_ra>
// kernel: tpu_custom_call.1
= control target key start
LH: loop header
LB: loop body
LE: loop exit
PB: predicated region body
PF: predicated region fallthrough
CT: control target
= control target key end

     0   :  { %s1313_s12 = smov 0   ;;  %s1315_s13 = smov 0   ;;  %s1570_s0 = inlined_call_operand.vmem [shape: bf16[512,4], index: 0, kind: input, shape index: {}]   ;;  %s1571_s1 = inlined_call_operand.vmem [shape: bf16[4,32], index: 1, kind: input, shape index: {}]   ;;  %s1572_s2 = inlined_call_operand.vmem [shape: f32[1,32], index: 2, kind: input, shape index: {}]   ;;  %s1573_s3 = inlined_call_operand.vmem [shape: bf16[512,32], index: 3, kind: output, shape index: {}]  }
   0x1   :  { %s1317_s14 = smov 0  }
   0x2 LB: > { %s32_s15 = sadd.s32 1, %s1286_s13  ;;  %p1068_p0 = scmp.ge.s32.totalorder %s1290_s14, 1  ;;  %s1290_s14 = sphi %s1317_s14, %s13_s14   ;;  %s1286_s13 = sphi %s1315_s13, %s1576_s13   ;;  %s1282_s12 = sphi %s1313_s12, %s1575_s12  }
   0x3   : > { %p34_p1 = scmp.ge.s32.totalorder %s32_s15, 2  ;;  %p186_p2 = scmp.lt.s32.totalorder %s1290_s14, 3 }
   0x5   : > { %s1578_s15 = smov (%p34_p1, %s32_s15), 0  ;;  %p187_p3 = pnand %p1068_p0, %p186_p2 }
   0x6   : > { %s1069_s18 = sshll.u32 (!%p187_p3), %s1282_s12, 5 }
   0x7   : > { %190 = sbr.rel (%p187_p3) target bundleno = 258 (0x102), region = 32  ;;  %p1339_p4 = scmp.lt.s32.totalorder (!%p187_p3), %s1069_s18, 63 }
   0xc   : > { %v356_v0 = vld [vmem:[%s1571_s1] sm:$0x3]  ;;  %vm486_vm0 = vcmask 1041408   ;;  %vm259_vm1 = vcmask 261120   ;;  %v1292_v2 = vmov 0.0   ;;  %s1580_s18 = smov (!%p1339_p4, %s1069_s18), 63 }
   0xd   : > { %1225 = vmatprep.subr.msk.bf16.mxu0 %vm486_vm0, %v356_v0  ;;  %1226 = vmatprep.subr.msk.bf16.mxu1 %vm486_vm0, %v356_v0  ;;  %v488_v1 = vsel %vm486_vm0, %v356_v0, 0  ;;  %262 = vst.msk [vmem:[#allocation2 + $0x10] sm:$0xff] %vm259_vm1, %v1292_v2  ;;  %260 = vst.msk [vmem:[#allocation2] sm:$0xff] %vm259_vm1, %v1292_v2  ;;  %s1070_s20 = sshll.u32 %s1580_s18, 2  ;;  %vm437_vm2 = vcmask 31744   ;;  %vm918_vm3 = vcmask 257024  }
   0xe   : > { %1190 = vmatpush3.bf16.msra.mxu0 %v488_v1  ;;  %1224 = vmatpush3.bf16.msra.mxu1 %v488_v1  ;;  %261 = vst.msk [vmem:[#allocation2 + $0x8] sm:$0xff] %vm259_vm1, %v1292_v2  ;;  %263 = vst.msk [vmem:[#allocation2 + $0x18] sm:$0xff] %vm259_vm1, %v1292_v2  ;;  %s1387_s23 = scalar_lea.vmem %s1570_s0, %s1070_s20  ;;  %v1429_v44 = vld [vmem:[%s1572_s2] ss:$0 sm:$0xff]  ;;  %s1441_s28 = scalar_lea.vmem %s1573_s3, %s1070_s20 }
   0xf   : > { %264 = vst.msk [vmem:[#allocation2 + $0x20] sm:$0xff] %vm259_vm1, %v1292_v2  ;;  %265 = vst.msk [vmem:[#allocation2 + $0x28] sm:$0xff] %vm259_vm1, %v1292_v2  ;;  %v1252_v3 = vld [vmem:[%s1387_s23] sm:$0xff]   ;;  %v1254_v5 = vld [vmem:[%s1387_s23 + $0x8] sm:$0xff]  }
  0x10   : > { %266 = vst.msk [vmem:[#allocation2 + $0x30] sm:$0xff] %vm259_vm1, %v1292_v2  ;;  %267 = vst.msk [vmem:[#allocation2 + $0x38] sm:$0xff] %vm259_vm1, %v1292_v2  ;;  %v1253_v4 = vld [vmem:[%s1387_s23 + $0x40] sm:$0xff]   ;;  %1191 = vmatprep.mubr.msk.bf16.mxu0 %vm437_vm2, %v1252_v3  ;;  %v1255_v6 = vld [vmem:[%s1387_s23 + $0x48] sm:$0xff]  }
  0x11   : > { %268 = vst.msk [vmem:[#allocation2 + $0x40] sm:$0xff] %vm259_vm1, %v1292_v2  ;;  %269 = vst.msk [vmem:[#allocation2 + $0x48] sm:$0xff] %vm259_vm1, %v1292_v2  ;;  %1207 = vmatprep.mubr.msk.bf16.mxu1 %vm437_vm2, %v1253_v4  ;;  %1192 = vmatmul.mubr.msk.bf16.vlgmr.msra.gmra.mxu0 %vm437_vm2, %v1254_v5  ;;  %v1256_v7 = vld [vmem:[%s1387_s23 + $0x10] sm:$0xff]   ;;  %v1258_v9 = vld [vmem:[%s1387_s23 + $0x18] sm:$0xff]  }
  0x12   : > { %270 = vst.msk [vmem:[#allocation2 + $0x50] sm:$0xff] %vm259_vm1, %v1292_v2  ;;  %271 = vst.msk [vmem:[#allocation2 + $0x58] sm:$0xff] %vm259_vm1, %v1292_v2  ;;  %1208 = vmatmul.mubr.msk.bf16.vlgmr.msra.gmra.mxu1 %vm437_vm2, %v1255_v6  ;;  %v1257_v8 = vld [vmem:[%s1387_s23 + $0x50] sm:$0xff]   ;;  %1195 = vmatprep.mubr.msk.bf16.mxu0 %vm437_vm2, %v1256_v7  ;;  %v1259_v10 = vld [vmem:[%s1387_s23 + $0x58] sm:$0xff]  }
  0x13   : > { %272 = vst.msk [vmem:[#allocation2 + $0x60] sm:$0xff] %vm259_vm1, %v1292_v2  ;;  %273 = vst.msk [vmem:[#allocation2 + $0x68] sm:$0xff] %vm259_vm1, %v1292_v2  ;;  %1211 = vmatprep.mubr.msk.bf16.mxu1 %vm437_vm2, %v1257_v8  ;;  %v1260_v11 = vld [vmem:[%s1387_s23 + $0x20] sm:$0xff]   ;;  %v1262_v13 = vld [vmem:[%s1387_s23 + $0x28] sm:$0xff]  }
  0x14   : > { %274 = vst.msk [vmem:[#allocation2 + $0x70] sm:$0xff] %vm259_vm1, %v1292_v2  ;;  %275 = vst.msk [vmem:[#allocation2 + $0x78] sm:$0xff] %vm259_vm1, %v1292_v2  ;;  %v1261_v12 = vld [vmem:[%s1387_s23 + $0x60] sm:$0xff]   ;;  %v1263_v14 = vld [vmem:[%s1387_s23 + $0x68] sm:$0xff]  }
  0x15   : > { %276 = vst.msk [vmem:[#allocation2 + $0x80] sm:$0xff] %vm259_vm1, %v1292_v2  ;;  %277 = vst.msk [vmem:[#allocation2 + $0x88] sm:$0xff] %vm259_vm1, %v1292_v2  ;;  %v1264_v15 = vld [vmem:[%s1387_s23 + $0x30] sm:$0xff]   ;;  %v1266_v17 = vld [vmem:[%s1387_s23 + $0x38] sm:$0xff]  }
  0x16   : > { %278 = vst.msk [vmem:[#allocation2 + $0x90] sm:$0xff] %vm259_vm1, %v1292_v2  ;;  %279 = vst.msk [vmem:[#allocation2 + $0x98] sm:$0xff] %vm259_vm1, %v1292_v2  ;;  %v1265_v16 = vld [vmem:[%s1387_s23 + $0x70] sm:$0xff]   ;;  %v1267_v18 = vld [vmem:[%s1387_s23 + $0x78] sm:$0xff]  }
  0x17   : > { %280 = vst.msk [vmem:[#allocation2 + $0xa0] sm:$0xff] %vm259_vm1, %v1292_v2  ;;  %281 = vst.msk [vmem:[#allocation2 + $0xa8] sm:$0xff] %vm259_vm1, %v1292_v2  ;;  %v326_v19 = vld [vmem:[#allocation2 + $0x10] sm:$0xff]  ;;  %v324_v22 = vld [vmem:[#allocation2] sm:$0xff] }
  0x18   : > { %282 = vst.msk [vmem:[#allocation2 + $0xb0] sm:$0xff] %vm259_vm1, %v1292_v2  ;;  %283 = vst.msk [vmem:[#allocation2 + $0xb8] sm:$0xff] %vm259_vm1, %v1292_v2  ;;  %v327_v28 = vld [vmem:[#allocation2 + $0x18] sm:$0xff]  ;;  %v325_v34 = vld [vmem:[#allocation2 + $0x8] sm:$0xff] }
  0x19   : > { %284 = vst.msk [vmem:[#allocation2 + $0xc0] sm:$0xff] %vm259_vm1, %v1292_v2  ;;  %285 = vst.msk [vmem:[#allocation2 + $0xc8] sm:$0xff] %vm259_vm1, %v1292_v2  ;;  %1196 = vmatmul.mubr.msk.bf16.gmra.mxu0 %vm437_vm2, %v1258_v9  ;;  %v330_v40 = vld [vmem:[#allocation2 + $0x30] sm:$0xff]  ;;  %v328_v47 = vld [vmem:[#allocation2 + $0x20] sm:$0xff] }
  0x1a   : > { %286 = vst.msk [vmem:[#allocation2 + $0xd0] sm:$0xff] %vm259_vm1, %v1292_v2  ;;  %287 = vst.msk [vmem:[#allocation2 + $0xd8] sm:$0xff] %vm259_vm1, %v1292_v2  ;;  %1212 = vmatmul.mubr.msk.bf16.gmra.mxu1 %vm437_vm2, %v1259_v10  ;;  %1199 = vmatprep.mubr.msk.bf16.mxu0 %vm437_vm2, %v1260_v11  ;;  %v331_v54 = vld [vmem:[#allocation2 + $0x38] sm:$0xff]  ;;  %v329_v0 = vld [vmem:[#allocation2 + $0x28] sm:$0xff] }
  0x1b   : > { %288 = vst.msk [vmem:[#allocation2 + $0xe0] sm:$0xff] %vm259_vm1, %v1292_v2  ;;  %289 = vst.msk [vmem:[#allocation2 + $0xe8] sm:$0xff] %vm259_vm1, %v1292_v2  ;;  %1215 = vmatprep.mubr.msk.bf16.mxu1 %vm437_vm2, %v1261_v12  ;;  %v334_v12 = vld [vmem:[#allocation2 + $0x50] sm:$0xff] }
  0x1c   : > { %290 = vst.msk [vmem:[#allocation2 + $0xf0] sm:$0xff] %vm259_vm1, %v1292_v2  ;;  %291 = vst.msk [vmem:[#allocation2 + $0xf8] sm:$0xff] %vm259_vm1, %v1292_v2  ;;  %v340_v25 = vld [vmem:[#allocation2 + $0x80] sm:$0xff]  ;;  %v341_v37 = vld [vmem:[#allocation2 + $0x88] sm:$0xff] }
  0x1d   : > { %v342_v20 = vld [vmem:[#allocation2 + $0x90] sm:$0xff]  ;;  %v343_v31 = vld [vmem:[#allocation2 + $0x98] sm:$0xff] }
  0x1e   : > { %v344_v50 = vld [vmem:[#allocation2 + $0xa0] sm:$0xff]  ;;  %v345_v6 = vld [vmem:[#allocation2 + $0xa8] sm:$0xff] }
  0x1f   : > { %v346_v43 = vld [vmem:[#allocation2 + $0xb0] sm:$0xff]  ;;  %v347_v59 = vld [vmem:[#allocation2 + $0xb8] sm:$0xff] }
  0x21   : > { %1200 = vmatmul.mubr.msk.bf16.gmra.mxu0 %vm437_vm2, %v1262_v13 }
  0x22   : > { %1216 = vmatmul.mubr.msk.bf16.gmra.mxu1 %vm437_vm2, %v1263_v14  ;;  %1203 = vmatprep.mubr.msk.bf16.mxu0 %vm437_vm2, %v1264_v15 }
  0x23   : > { %1219 = vmatprep.mubr.msk.bf16.mxu1 %vm437_vm2, %v1265_v16 }
  0x29   : > { %1204 = vmatmul.mubr.msk.bf16.gmra.mxu0 %vm437_vm2, %v1266_v17 }
  0x2a   : > { %1220 = vmatmul.mubr.msk.bf16.gmra.mxu1 %vm437_vm2, %v1267_v18  ;;  %v350_v18 = vld [vmem:[#allocation2 + $0xd0] sm:$0xff] }
  0xd1   : > { %v1193_v21 = vpop.f32.mrf.mxu0 }
  0xd2   : > { %v653_v23 = vadd.f32 %v1193_v21, %v326_v19  ;;  %v1209_v24 = vpop.f32.mrf.mxu1 }
  0xd3   : > { %v669_v26 = vadd.f32 %v1209_v24, %v342_v20  ;;  %v524_v27 = vpop.f32.mrf.mxu0  ;;  %v332_v24 = vld [vmem:[#allocation2 + $0x40] sm:$0xff] }
  0xd4   : > { %686 = vst.msk [vmem:[#allocation2 + $0x10] sm:$0xff] %vm259_vm1, %v653_v23  ;;  %v651_v29 = vadd.f32 %v524_v27, %v324_v22  ;;  %v588_v30 = vpop.f32.mrf.mxu1 }
  0xd5   : > { %702 = vst.msk [vmem:[#allocation2 + $0x90] sm:$0xff] %vm259_vm1, %v669_v26  ;;  %v667_v32 = vadd.f32 %v588_v30, %v340_v25  ;;  %v1194_v33 = vpop.f32.mrf.mxu0  ;;  %v348_v30 = vld [vmem:[#allocation2 + $0xc0] sm:$0xff] }
  0xd6   : > { %684 = vst.msk [vmem:[#allocation2] sm:$0xff] %vm259_vm1, %v651_v29  ;;  %v654_v35 = vadd.f32 %v1194_v33, %v327_v28  ;;  %v1210_v36 = vpop.f32.mrf.mxu1 }
  0xd7   : > { %700 = vst.msk [vmem:[#allocation2 + $0x80] sm:$0xff] %vm259_vm1, %v667_v32  ;;  %v670_v38 = vadd.f32 %v1210_v36, %v343_v31  ;;  %v527_v39 = vpop.f32.mrf.mxu0  ;;  %v335_v36 = vld [vmem:[#allocation2 + $0x58] sm:$0xff] }
  0xd8   : > { %687 = vst.msk [vmem:[#allocation2 + $0x18] sm:$0xff] %vm259_vm1, %v654_v35  ;;  %v652_v41 = vadd.f32 %v527_v39, %v325_v34  ;;  %v591_v42 = vpop.f32.mrf.mxu1 }
  0xd9   : > { %703 = vst.msk [vmem:[#allocation2 + $0x98] sm:$0xff] %vm259_vm1, %v670_v38  ;;  %v668_v45 = vadd.f32 %v591_v42, %v341_v37  ;;  %v1197_v46 = vpop.f32.mrf.mxu0  ;;  %v351_v42 = vld [vmem:[#allocation2 + $0xd8] sm:$0xff] }
  0xda   : > { %685 = vst.msk [vmem:[#allocation2 + $0x8] sm:$0xff] %vm259_vm1, %v652_v41  ;;  %v657_v48 = vadd.f32 %v1197_v46, %v330_v40  ;;  %v1213_v49 = vpop.f32.mrf.mxu1 }
  0xdb   : > { %v721_v51 = vld [vmem:[#allocation2 + $0x10] sm:$0xff]  ;;  %701 = vst.msk [vmem:[#allocation2 + $0x88] sm:$0xff] %vm259_vm1, %v668_v45  ;;  %v673_v52 = vadd.f32 %v1213_v49, %v346_v43  ;;  %v540_v53 = vpop.f32.mrf.mxu0  ;;  %v333_v49 = vld [vmem:[#allocation2 + $0x48] sm:$0xff] }
  0xdc   : > { %v760_v55 = vadd.f32 %v1429_v44, %v721_v51  ;;  %v737_v56 = vld [vmem:[#allocation2 + $0x90] sm:$0xff]  ;;  %690 = vst.msk [vmem:[#allocation2 + $0x30] sm:$0xff] %vm259_vm1, %v657_v48  ;;  %v655_v57 = vadd.f32 %v540_v53, %v328_v47  ;;  %v604_v58 = vpop.f32.mrf.mxu1 }
  0xdd   : > { %v776_v60 = vadd.f32 %v1429_v44, %v737_v56  ;;  %v719_v61 = vld [vmem:[#allocation2] sm:$0xff]  ;;  %706 = vst.msk [vmem:[#allocation2 + $0xb0] sm:$0xff] %vm259_vm1, %v673_v52  ;;  %v671_v62 = vadd.f32 %v604_v58, %v344_v50  ;;  %v1198_v63 = vpop.f32.mrf.mxu0 }
  0xde   : > { %v1142_v1 = vpack.c.bf16 %v760_v55, %v760_v55  ;;  %v758_v2 = vadd.f32 %v1429_v44, %v719_v61  ;;  %v735_v3 = vld [vmem:[#allocation2 + $0x80] sm:$0xff]  ;;  %688 = vst.msk [vmem:[#allocation2 + $0x20] sm:$0xff] %vm259_vm1, %v655_v57  ;;  %v658_v4 = vadd.f32 %v1198_v63, %v331_v54  ;;  %v1214_v5 = vpop.f32.mrf.mxu1  ;;  %v349_v55 = vld [vmem:[#allocation2 + $0xc8] sm:$0xff]  ;;  %v338_v61 = vld [vmem:[#allocation2 + $0x70] sm:$0xff] }
  0xdf   : > { %v1158_v7 = vpack.c.bf16 %v776_v60, %v776_v60  ;;  %v774_v8 = vadd.f32 %v1429_v44, %v735_v3  ;;  %v722_v9 = vld [vmem:[#allocation2 + $0x18] sm:$0xff]  ;;  %704 = vst.msk [vmem:[#allocation2 + $0xa0] sm:$0xff] %vm259_vm1, %v671_v62  ;;  %v674_v10 = vadd.f32 %v1214_v5, %v347_v59  ;;  %v543_v11 = vpop.f32.mrf.mxu0  ;;  %v354_v3 = vld [vmem:[#allocation2 + $0xf0] sm:$0xff] }
  0xe0   : > { %921 = vst.msk [vmem:[%s1441_s28 + $0x8] sm:$0xf] %vm918_vm3, %v1142_v1  ;;  %v1140_v13 = vpack.c.bf16 %v758_v2, %v758_v2  ;;  %v761_v14 = vadd.f32 %v1429_v44, %v722_v9  ;;  %v738_v15 = vld [vmem:[#allocation2 + $0x98] sm:$0xff]  ;;  %v656_v16 = vadd.f32 %v543_v11, %v329_v0  ;;  %v607_v17 = vpop.f32.mrf.mxu1  ;;  %v336_v9 = vld [vmem:[#allocation2 + $0x60] sm:$0xff] }
  0xe1   : > { %691 = vst.msk [vmem:[#allocation2 + $0x38] sm:$0xff] %vm259_vm1, %v658_v4  ;;  %v1156_v19 = vpack.c.bf16 %v774_v8, %v774_v8  ;;  %v777_v20 = vadd.f32 %v1429_v44, %v738_v15  ;;  %v720_v21 = vld [vmem:[#allocation2 + $0x8] sm:$0xff]  ;;  %707 = vst.msk [vmem:[#allocation2 + $0xb8] sm:$0xff] %vm259_vm1, %v674_v10  ;;  %v672_v22 = vadd.f32 %v607_v17, %v345_v6  ;;  %v1201_v23 = vpop.f32.mrf.mxu0  ;;  %v352_v15 = vld [vmem:[#allocation2 + $0xe0] sm:$0xff] }
  0xe2   : > { %937 = vst.msk [vmem:[%s1441_s28 + $0x48] sm:$0xf] %vm918_vm3, %v1158_v7  ;;  %919 = vst.msk [vmem:[%s1441_s28] sm:$0xf] %vm918_vm3, %v1140_v13  ;;  %v1143_v25 = vpack.c.bf16 %v761_v14, %v761_v14  ;;  %v759_v26 = vadd.f32 %v1429_v44, %v720_v21  ;;  %v736_v27 = vld [vmem:[#allocation2 + $0x88] sm:$0xff]  ;;  %v661_v28 = vadd.f32 %v1201_v23, %v334_v12  ;;  %v1217_v29 = vpop.f32.mrf.mxu1  ;;  %v339_v21 = vld [vmem:[#allocation2 + $0x78] sm:$0xff] }
  0xe3   : > { %689 = vst.msk [vmem:[#allocation2 + $0x28] sm:$0xff] %vm259_vm1, %v656_v16  ;;  %v1159_v31 = vpack.c.bf16 %v777_v20, %v777_v20  ;;  %v775_v32 = vadd.f32 %v1429_v44, %v736_v27  ;;  %v725_v33 = vld [vmem:[#allocation2 + $0x30] sm:$0xff]  ;;  %705 = vst.msk [vmem:[#allocation2 + $0xa8] sm:$0xff] %vm259_vm1, %v672_v22  ;;  %v677_v34 = vadd.f32 %v1217_v29, %v350_v18  ;;  %v556_v35 = vpop.f32.mrf.mxu0  ;;  %v355_v27 = vld [vmem:[#allocation2 + $0xf8] sm:$0xff] }
  0xe4   : > { %935 = vst.msk [vmem:[%s1441_s28 + $0x40] sm:$0xf] %vm918_vm3, %v1156_v19  ;;  %922 = vst.msk [vmem:[%s1441_s28 + $0xc] sm:$0xf] %vm918_vm3, %v1143_v25  ;;  %v1141_v37 = vpack.c.bf16 %v759_v26, %v759_v26  ;;  %v764_v38 = vadd.f32 %v1429_v44, %v725_v33  ;;  %v741_v39 = vld [vmem:[#allocation2 + $0xb0] sm:$0xff]  ;;  %v659_v40 = vadd.f32 %v556_v35, %v332_v24  ;;  %v620_v41 = vpop.f32.mrf.mxu1  ;;  %v337_v33 = vld [vmem:[#allocation2 + $0x68] sm:$0xff] }
  0xe5   : > { %694 = vst.msk [vmem:[#allocation2 + $0x50] sm:$0xff] %vm259_vm1, %v661_v28  ;;  %v1157_v43 = vpack.c.bf16 %v775_v32, %v775_v32  ;;  %v780_v45 = vadd.f32 %v1429_v44, %v741_v39  ;;  %v723_v46 = vld [vmem:[#allocation2 + $0x20] sm:$0xff]  ;;  %710 = vst.msk [vmem:[#allocation2 + $0xd0] sm:$0xff] %vm259_vm1, %v677_v34  ;;  %v675_v47 = vadd.f32 %v620_v41, %v348_v30  ;;  %v1202_v48 = vpop.f32.mrf.mxu0  ;;  %v353_v39 = vld [vmem:[#allocation2 + $0xe8] sm:$0xff] }
  0xe6   : > { %938 = vst.msk [vmem:[%s1441_s28 + $0x4c] sm:$0xf] %vm918_vm3, %v1159_v31  ;;  %920 = vst.msk [vmem:[%s1441_s28 + $0x4] sm:$0xf] %vm918_vm3, %v1141_v37  ;;  %v1146_v50 = vpack.c.bf16 %v764_v38, %v764_v38  ;;  %v762_v51 = vadd.f32 %v1429_v44, %v723_v46  ;;  %v739_v52 = vld [vmem:[#allocation2 + $0xa0] sm:$0xff]  ;;  %v662_v53 = vadd.f32 %v1202_v48, %v335_v36  ;;  %v1218_v54 = vpop.f32.mrf.mxu1 }
  0xe7   : > { %692 = vst.msk [vmem:[#allocation2 + $0x40] sm:$0xff] %vm259_vm1, %v659_v40  ;;  %v1162_v56 = vpack.c.bf16 %v780_v45, %v780_v45  ;;  %v778_v57 = vadd.f32 %v1429_v44, %v739_v52  ;;  %708 = vst.msk [vmem:[#allocation2 + $0xc0] sm:$0xff] %vm259_vm1, %v675_v47  ;;  %v678_v59 = vadd.f32 %v1218_v54, %v351_v42  ;;  %v559_v60 = vpop.f32.mrf.mxu0 }
  0xe8   : > { %936 = vst.msk [vmem:[%s1441_s28 + $0x44] sm:$0xf] %vm918_vm3, %v1157_v43  ;;  %v726_v58 = vld [vmem:[#allocation2 + $0x38] sm:$0xff]  ;;  %925 = vst.msk [vmem:[%s1441_s28 + $0x18] sm:$0xf] %vm918_vm3, %v1146_v50  ;;  %v1144_v62 = vpack.c.bf16 %v762_v51, %v762_v51  ;;  %v660_v1 = vadd.f32 %v559_v60, %v333_v49  ;;  %v623_v2 = vpop.f32.mrf.mxu1 }
  0xe9   : > { %v765_v63 = vadd.f32 %v1429_v44, %v726_v58  ;;  %v742_v0 = vld [vmem:[#allocation2 + $0xb8] sm:$0xff]  ;;  %695 = vst.msk [vmem:[#allocation2 + $0x58] sm:$0xff] %vm259_vm1, %v662_v53  ;;  %v1160_v4 = vpack.c.bf16 %v778_v57, %v778_v57  ;;  %711 = vst.msk [vmem:[#allocation2 + $0xd8] sm:$0xff] %vm259_vm1, %v678_v59  ;;  %v676_v7 = vadd.f32 %v623_v2, %v349_v55  ;;  %v1205_v8 = vpop.f32.mrf.mxu0 }
  0xea   : > { %941 = vst.msk [vmem:[%s1441_s28 + $0x58] sm:$0xf] %vm918_vm3, %v1162_v56  ;;  %v781_v5 = vadd.f32 %v1429_v44, %v742_v0  ;;  %v724_v6 = vld [vmem:[#allocation2 + $0x28] sm:$0xff]  ;;  %923 = vst.msk [vmem:[%s1441_s28 + $0x10] sm:$0xf] %vm918_vm3, %v1144_v62  ;;  %v665_v13 = vadd.f32 %v1205_v8, %v338_v61  ;;  %v1221_v14 = vpop.f32.mrf.mxu1 }
  0xeb   : > { %v1147_v10 = vpack.c.bf16 %v765_v63, %v765_v63  ;;  %v763_v11 = vadd.f32 %v1429_v44, %v724_v6  ;;  %v740_v12 = vld [vmem:[#allocation2 + $0xa8] sm:$0xff]  ;;  %693 = vst.msk [vmem:[#allocation2 + $0x48] sm:$0xff] %vm259_vm1, %v660_v1  ;;  %709 = vst.msk [vmem:[#allocation2 + $0xc8] sm:$0xff] %vm259_vm1, %v676_v7  ;;  %v681_v19 = vadd.f32 %v1221_v14, %v354_v3  ;;  %v572_v20 = vpop.f32.mrf.mxu0 }
  0xec   : > { %939 = vst.msk [vmem:[%s1441_s28 + $0x50] sm:$0xf] %vm918_vm3, %v1160_v4  ;;  %v1163_v16 = vpack.c.bf16 %v781_v5, %v781_v5  ;;  %v779_v17 = vadd.f32 %v1429_v44, %v740_v12  ;;  %v729_v18 = vld [vmem:[#allocation2 + $0x50] sm:$0xff]  ;;  %v663_v25 = vadd.f32 %v572_v20, %v336_v9  ;;  %v636_v26 = vpop.f32.mrf.mxu1 }
  0xed   : > { %926 = vst.msk [vmem:[%s1441_s28 + $0x1c] sm:$0xf] %vm918_vm3, %v1147_v10  ;;  %v1145_v22 = vpack.c.bf16 %v763_v11, %v763_v11  ;;  %v768_v23 = vadd.f32 %v1429_v44, %v729_v18  ;;  %v745_v24 = vld [vmem:[#allocation2 + $0xd0] sm:$0xff]  ;;  %v679_v31 = vadd.f32 %v636_v26, %v352_v15  ;;  %v1206_v32 = vpop.f32.mrf.mxu0 }
  0xee   : > { %698 = vst.msk [vmem:[#allocation2 + $0x70] sm:$0xff] %vm259_vm1, %v665_v13  ;;  %v1161_v28 = vpack.c.bf16 %v779_v17, %v779_v17  ;;  %v784_v29 = vadd.f32 %v1429_v44, %v745_v24  ;;  %v727_v30 = vld [vmem:[#allocation2 + $0x40] sm:$0xff]  ;;  %714 = vst.msk [vmem:[#allocation2 + $0xf0] sm:$0xff] %vm259_vm1, %v681_v19  ;;  %v666_v37 = vadd.f32 %v1206_v32, %v339_v21  ;;  %v1222_v38 = vpop.f32.mrf.mxu1 }
  0xef   : > { %942 = vst.msk [vmem:[%s1441_s28 + $0x5c] sm:$0xf] %vm918_vm3, %v1163_v16  ;;  %924 = vst.msk [vmem:[%s1441_s28 + $0x14] sm:$0xf] %vm918_vm3, %v1145_v22  ;;  %v1150_v34 = vpack.c.bf16 %v768_v23, %v768_v23  ;;  %v766_v35 = vadd.f32 %v1429_v44, %v727_v30  ;;  %v743_v36 = vld [vmem:[#allocation2 + $0xc0] sm:$0xff]  ;;  %v682_v43 = vadd.f32 %v1222_v38, %v355_v27  ;;  %v575_v45 = vpop.f32.mrf.mxu0 }
  0xf0   : > { %696 = vst.msk [vmem:[#allocation2 + $0x60] sm:$0xff] %vm259_vm1, %v663_v25  ;;  %v1166_v40 = vpack.c.bf16 %v784_v29, %v784_v29  ;;  %v782_v41 = vadd.f32 %v1429_v44, %v743_v36  ;;  %v730_v42 = vld [vmem:[#allocation2 + $0x58] sm:$0xff]  ;;  %712 = vst.msk [vmem:[#allocation2 + $0xe0] sm:$0xff] %vm259_vm1, %v679_v31  ;;  %v664_v49 = vadd.f32 %v575_v45, %v337_v33  ;;  %v639_v50 = vpop.f32.mrf.mxu1 }
  0xf1   : > { %940 = vst.msk [vmem:[%s1441_s28 + $0x54] sm:$0xf] %vm918_vm3, %v1161_v28  ;;  %929 = vst.msk [vmem:[%s1441_s28 + $0x28] sm:$0xf] %vm918_vm3, %v1150_v34  ;;  %v1148_v46 = vpack.c.bf16 %v766_v35, %v766_v35  ;;  %v769_v47 = vadd.f32 %v1429_v44, %v730_v42  ;;  %v746_v48 = vld [vmem:[#allocation2 + $0xd8] sm:$0xff]  ;;  %v680_v54 = vadd.f32 %v639_v50, %v353_v39 }
  0xf2   : > { %699 = vst.msk [vmem:[#allocation2 + $0x78] sm:$0xff] %vm259_vm1, %v666_v37  ;;  %v1164_v51 = vpack.c.bf16 %v782_v41, %v782_v41  ;;  %v785_v52 = vadd.f32 %v1429_v44, %v746_v48  ;;  %v728_v53 = vld [vmem:[#allocation2 + $0x48] sm:$0xff]  ;;  %715 = vst.msk [vmem:[#allocation2 + $0xf8] sm:$0xff] %vm259_vm1, %v682_v43 }
  0xf3   : > { %945 = vst.msk [vmem:[%s1441_s28 + $0x68] sm:$0xf] %vm918_vm3, %v1166_v40  ;;  %927 = vst.msk [vmem:[%s1441_s28 + $0x20] sm:$0xf] %vm918_vm3, %v1148_v46  ;;  %v1151_v55 = vpack.c.bf16 %v769_v47, %v769_v47  ;;  %v767_v56 = vadd.f32 %v1429_v44, %v728_v53  ;;  %v744_v57 = vld [vmem:[#allocation2 + $0xc8] sm:$0xff] }
  0xf4   : > { %697 = vst.msk [vmem:[#allocation2 + $0x68] sm:$0xff] %vm259_vm1, %v664_v49  ;;  %v1167_v58 = vpack.c.bf16 %v785_v52, %v785_v52  ;;  %v783_v59 = vadd.f32 %v1429_v44, %v744_v57  ;;  %713 = vst.msk [vmem:[#allocation2 + $0xe8] sm:$0xff] %vm259_vm1, %v680_v54 }
  0xf5   : > { %943 = vst.msk [vmem:[%s1441_s28 + $0x60] sm:$0xf] %vm918_vm3, %v1164_v51  ;;  %v733_v60 = vld [vmem:[#allocation2 + $0x70] sm:$0xff]  ;;  %930 = vst.msk [vmem:[%s1441_s28 + $0x2c] sm:$0xf] %vm918_vm3, %v1151_v55  ;;  %v1149_v61 = vpack.c.bf16 %v767_v56, %v767_v56 }
  0xf6   : > { %v772_v62 = vadd.f32 %v1429_v44, %v733_v60  ;;  %v749_v63 = vld [vmem:[#allocation2 + $0xf0] sm:$0xff]  ;;  %946 = vst.msk [vmem:[%s1441_s28 + $0x6c] sm:$0xf] %vm918_vm3, %v1167_v58  ;;  %v1165_v0 = vpack.c.bf16 %v783_v59, %v783_v59 }
  0xf7   : > { %v788_v1 = vadd.f32 %v1429_v44, %v749_v63  ;;  %v731_v2 = vld [vmem:[#allocation2 + $0x60] sm:$0xff]  ;;  %928 = vst.msk [vmem:[%s1441_s28 + $0x24] sm:$0xf] %vm918_vm3, %v1149_v61 }
  0xf8   : > { %v1154_v3 = vpack.c.bf16 %v772_v62, %v772_v62  ;;  %v770_v4 = vadd.f32 %v1429_v44, %v731_v2  ;;  %v747_v5 = vld [vmem:[#allocation2 + $0xe0] sm:$0xff]  ;;  %944 = vst.msk [vmem:[%s1441_s28 + $0x64] sm:$0xf] %vm918_vm3, %v1165_v0 }
  0xf9   : > { %v1170_v6 = vpack.c.bf16 %v788_v1, %v788_v1  ;;  %v786_v7 = vadd.f32 %v1429_v44, %v747_v5  ;;  %v734_v8 = vld [vmem:[#allocation2 + $0x78] sm:$0xff] }
  0xfa   : > { %933 = vst.msk [vmem:[%s1441_s28 + $0x38] sm:$0xf] %vm918_vm3, %v1154_v3  ;;  %v1152_v9 = vpack.c.bf16 %v770_v4, %v770_v4  ;;  %v773_v10 = vadd.f32 %v1429_v44, %v734_v8  ;;  %v750_v11 = vld [vmem:[#allocation2 + $0xf8] sm:$0xff] }
  0xfb   : > { %949 = vst.msk [vmem:[%s1441_s28 + $0x78] sm:$0xf] %vm918_vm3, %v1170_v6  ;;  %v1168_v12 = vpack.c.bf16 %v786_v7, %v786_v7  ;;  %v789_v13 = vadd.f32 %v1429_v44, %v750_v11  ;;  %v732_v14 = vld [vmem:[#allocation2 + $0x68] sm:$0xff] }
  0xfc   : > { %931 = vst.msk [vmem:[%s1441_s28 + $0x30] sm:$0xf] %vm918_vm3, %v1152_v9  ;;  %v1155_v15 = vpack.c.bf16 %v773_v10, %v773_v10  ;;  %v771_v16 = vadd.f32 %v1429_v44, %v732_v14  ;;  %v748_v17 = vld [vmem:[#allocation2 + $0xe8] sm:$0xff] }
  0xfd   : > { %947 = vst.msk [vmem:[%s1441_s28 + $0x70] sm:$0xf] %vm918_vm3, %v1168_v12  ;;  %v1171_v18 = vpack.c.bf16 %v789_v13, %v789_v13  ;;  %v787_v19 = vadd.f32 %v1429_v44, %v748_v17 }
  0xfe   : > { %934 = vst.msk [vmem:[%s1441_s28 + $0x3c] sm:$0xf] %vm918_vm3, %v1155_v15  ;;  %v1153_v20 = vpack.c.bf16 %v771_v16, %v771_v16 }
  0xff   : > { %950 = vst.msk [vmem:[%s1441_s28 + $0x7c] sm:$0xf] %vm918_vm3, %v1171_v18  ;;  %v1169_v21 = vpack.c.bf16 %v787_v19, %v787_v19 }
 0x100   : > { %932 = vst.msk [vmem:[%s1441_s28 + $0x34] sm:$0xf] %vm918_vm3, %v1153_v20 }
 0x101   : > { %948 = vst.msk [vmem:[%s1441_s28 + $0x74] sm:$0xf] %vm918_vm3, %v1169_v21 }
 0x102 PF: > { %s13_s14 = sadd.s32 1, %s1290_s14   ;;  %s1575_s12 = smov %s1286_s13 }
 0x103   : > { %p10_p5 = scmp.ge.s32.totalorder %s13_s14, 4   ;;  %s1576_s13 = smov %s1578_s15 }
 0x105   :  { %12 = sbr.rel (!%p10_p5) target bundleno = 2 (0x2), region = 76 }

</bundles_post_ra>
